<compile_context>
chip_gen: v5e
topology: v5e:2x2
jax: 0.10.0
libtpu: 0.0.40
codegen_flags: <defaults>
</compile_context>

<pallas_src>
import jax
import jax.numpy as jnp
from jax import lax
from jax.experimental import pallas as pl
from jax.experimental.pallas import tpu as pltpu


def attack_mlp_kernel(x_ref, w1_ref, b1_ref, w2_ref, b2_ref, w3_ref, b3_ref, o_ref):
    # fc1: (64, in) x (tb, in) contracted on the last dims -> (64, tb).
    # x comes in untransposed; the MXU handles the "NT" contraction natively.
    h1 = lax.dot_general(
        w1_ref[...], x_ref[...],
        dimension_numbers=(((1,), (1,)), ((), ())),
        preferred_element_type=jnp.float32)
    h1 = jnp.maximum(h1 + b1_ref[...], 0.0)          # f32 bias + ReLU (v5e-safe)
    # TODO(synk): Dropout(0.5) is inference-mode identity; training-mode masking not implemented.
    # fc2 + ReLU: (32, 64) @ (64, tb) -> (32, tb), all f32 (w2 is VMEM-resident;
    # bf16 here would save no HBM bytes and would add full-slab VPU casts).
    h2 = jnp.dot(w2_ref[...], h1, preferred_element_type=jnp.float32)
    h2 = jnp.maximum(h2 + b2_ref[...], 0.0)
    # fc3 + sigmoid: (1, 32) @ (32, tb) -> (1, tb)   (lane-dense output store)
    logits = jnp.dot(w3_ref[...], h2, preferred_element_type=jnp.float32)
    o_ref[...] = jax.nn.sigmoid(logits + b3_ref[...]).astype(o_ref.dtype)


def _cdiv(a, b):
    return -(-a // b)


def _round_up(n, m):
    return _cdiv(n, m) * m


def _choose_tile(batch, block_b):
    """Pick (tile_rows, padded_batch, num_tiles): tiles are 128-row multiples,
    capped by block_b, and >=2 tiles whenever possible (v7x megacore)."""
    padded128 = _round_up(max(batch, 1), 128)
    block_b = max(128, int(block_b))
    num_tiles = _cdiv(padded128, block_b)
    if padded128 >= 256:
        num_tiles = max(num_tiles, 2)
    tb = _round_up(_cdiv(padded128, num_tiles), 128)
    padded_b = _round_up(padded128, tb)
    return tb, padded_b, padded_b // tb


def _reference_forward(x, w1, b1, w2, b2, w3, b3):
    """Pure-JAX reference (PyTorch nn.Linear layout: w = (out, in), b = (out,))."""
    h1 = jnp.maximum(x @ w1.T + b1, 0.0)
    h2 = jnp.maximum(h1 @ w2.T + b2, 0.0)
    return jax.nn.sigmoid(h2 @ w3.T + b3)


def attack_model_forward(x, w1, b1, w2, b2, w3, b3, *,
                         block_b=16384, use_bf16=True, min_pallas_batch=512,
                         vmem_limit_bytes=48 * 1024 * 1024):
    """x: (B, input_size) f32 -> (B, 1) f32 sigmoid probabilities.

    Weights/biases are in PyTorch nn.Linear layout: w = (out, in), b = (out,).
    For B < min_pallas_batch the pure-JAX path is used (per-call dispatch cost
    dominates this ~5 KFLOP/row model at tiny batches).  use_bf16 casts only
    the HBM-streamed x and w1 to bf16 (f32 accumulation, f32 bias/activations).
    """
    B, in_size = x.shape
    if B < min_pallas_batch:
        return _reference_forward(x, w1, b1, w2, b2, w3, b3)

    tb, padded_b, num_tiles = _choose_tile(B, block_b)

    mm_dtype = jnp.bfloat16 if use_bf16 else jnp.float32
    # Cast BEFORE any pad so the (only remaining) wrapper copy is half-size and
    # fuses with the pad; skip the pad entirely when B already lines up.
    xp = x.astype(mm_dtype)
    if padded_b != B:
        xp = jnp.pad(xp, ((0, padded_b - B), (0, 0)))
    w1m = w1.astype(mm_dtype)
    w2f = w2.astype(jnp.float32)
    w3f = w3.astype(jnp.float32)
    # Biases as (out, 1) f32 columns -> clean broadcast across batch lanes.
    b1c = b1.reshape(-1, 1).astype(jnp.float32)
    b2c = b2.reshape(-1, 1).astype(jnp.float32)
    b3c = b3.reshape(-1, 1).astype(jnp.float32)

    h1_dim = w1.shape[0]   # 64
    h2_dim = w2.shape[0]   # 32
    o_dim = w3.shape[0]    # 1

    out = pl.pallas_call(
        attack_mlp_kernel,
        out_shape=jax.ShapeDtypeStruct((o_dim, padded_b), jnp.float32),
        grid_spec=pltpu.PrefetchScalarGridSpec(
            num_scalar_prefetch=0,
            grid=(num_tiles,),
            in_specs=[
                # x streams as (tb, in_size) row blocks (double-buffered DMA).
                pl.BlockSpec((tb, in_size), lambda i: (i, 0)),
                # Weights / biases: constant index_map -> loaded once, VMEM-resident.
                pl.BlockSpec((h1_dim, in_size), lambda i: (0, 0)),
                pl.BlockSpec((h1_dim, 1), lambda i: (0, 0)),
                pl.BlockSpec((h2_dim, h1_dim), lambda i: (0, 0)),
                pl.BlockSpec((h2_dim, 1), lambda i: (0, 0)),
                pl.BlockSpec((o_dim, h2_dim), lambda i: (0, 0)),
                pl.BlockSpec((o_dim, 1), lambda i: (0, 0)),
            ],
            out_specs=pl.BlockSpec((o_dim, tb), lambda i: (0, i)),
        ),
        compiler_params=pltpu.CompilerParams(
            # Independent batch tiles -> megacore sharding on v7x.
            dimension_semantics=("parallel",),
            vmem_limit_bytes=vmem_limit_bytes,
        ),
    )(xp, w1m, b1c, w2f, b2c, w3f, b3c)

    return out[0, :B].reshape(B, 1)


def init_params(key, input_size=10):
    """Deterministic synthetic params in PyTorch nn.Linear layout."""
    k1, k2, k3, k4, k5, k6 = jax.random.split(key, 6)
    w1 = jax.random.normal(k1, (64, input_size), jnp.float32) / jnp.sqrt(input_size)
    b1 = jax.random.normal(k2, (64,), jnp.float32) * 0.01
    w2 = jax.random.normal(k3, (32, 64), jnp.float32) / 8.0
    b2 = jax.random.normal(k4, (32,), jnp.float32) * 0.01
    w3 = jax.random.normal(k5, (1, 32), jnp.float32) / jnp.sqrt(32.0)
    b3 = jax.random.normal(k6, (1,), jnp.float32) * 0.01
    return w1, b1, w2, b2, w3, b3


if __name__ == "__main__":
    key = jax.random.PRNGKey(0)
    kx_small, kx_big, kp = jax.random.split(key, 3)

    input_size = 10
    params = init_params(kp, input_size=input_size)

    # Small-batch check: force the Pallas path (single 128-lane tile), f32 for
    # an exact comparison against the pure-JAX reference.
    x_small = jax.random.normal(kx_small, (8, input_size), jnp.float32)
    out_small = jax.block_until_ready(
        attack_model_forward(x_small, *params, use_bf16=False, min_pallas_batch=0))
    ref_small = _reference_forward(x_small, *params)
    assert out_small.shape == (8, 1)
    assert jnp.allclose(out_small, ref_small, atol=1e-5, rtol=1e-5)

    # Gridded + padded check: batch 300 -> multiple batch tiles.
    x_big = jax.random.normal(kx_big, (300, input_size), jnp.float32)
    ref_big = _reference_forward(x_big, *params)

    out_big_f32 = jax.block_until_ready(
        attack_model_forward(x_big, *params, block_b=128, use_bf16=False,
                             min_pallas_batch=0))
    assert out_big_f32.shape == (300, 1)
    assert jnp.allclose(out_big_f32, ref_big, atol=1e-5, rtol=1e-5)

    # Default (bf16 x/w1 stream) path: looser tolerance is the expected
    # precision change from the bf16 input cast, not a bug.
    out_big_bf16 = jax.block_until_ready(
        attack_model_forward(x_big, *params, block_b=128, min_pallas_batch=0))
    assert out_big_bf16.shape == (300, 1)
    assert jnp.allclose(out_big_bf16, ref_big, atol=2e-2, rtol=2e-2)

    print("KERNEL_OK")
</pallas_src>

<mosaic_0001>
module attributes {stable_mosaic.version = 11 : i64} {
  func.func @attack_mlp_kernel(%arg0: i32, %arg1: memref<128x10xf32, #tpu.memory_space<vmem>>, %arg2: memref<64x10xf32, #tpu.memory_space<vmem>>, %arg3: memref<64x1xf32, #tpu.memory_space<vmem>>, %arg4: memref<32x64xf32, #tpu.memory_space<vmem>>, %arg5: memref<32x1xf32, #tpu.memory_space<vmem>>, %arg6: memref<1x32xf32, #tpu.memory_space<vmem>>, %arg7: memref<1x1xf32, #tpu.memory_space<vmem>>, %arg8: memref<1x128xf32, #tpu.memory_space<vmem>>) attributes {dimension_semantics = [#tpu.dimension_semantics<parallel>], iteration_bounds = array<i64: 1>, scalar_prefetch = 0 : i64, scratch_operands = 0 : i64, tpu.core_type = #tpu.core_type<tc>, window_params = [{transform_indices = @transform_0, window_bounds = array<i64: 128, 10>}, {pipeline_mode = #tpu.pipeline_mode<synchronous>, transform_indices = @transform_1, window_bounds = array<i64: 64, 10>}, {pipeline_mode = #tpu.pipeline_mode<synchronous>, transform_indices = @transform_2, window_bounds = array<i64: 64, 1>}, {pipeline_mode = #tpu.pipeline_mode<synchronous>, transform_indices = @transform_3, window_bounds = array<i64: 32, 64>}, {pipeline_mode = #tpu.pipeline_mode<synchronous>, transform_indices = @transform_4, window_bounds = array<i64: 32, 1>}, {pipeline_mode = #tpu.pipeline_mode<synchronous>, transform_indices = @transform_5, window_bounds = array<i64: 1, 32>}, {pipeline_mode = #tpu.pipeline_mode<synchronous>, transform_indices = @transform_6, window_bounds = array<i64: 1, 1>}, {transform_indices = @transform_7, window_bounds = array<i64: 1, 128>}]} {
    %c0 = arith.constant 0 : index
    %c0_0 = arith.constant 0 : index
    %0 = vector.load %arg2[%c0, %c0_0] : memref<64x10xf32, #tpu.memory_space<vmem>>, vector<64x10xf32>
    %c0_1 = arith.constant 0 : index
    %c0_2 = arith.constant 0 : index
    %1 = vector.load %arg1[%c0_1, %c0_2] : memref<128x10xf32, #tpu.memory_space<vmem>>, vector<128x10xf32>
    %cst = arith.constant dense<0.000000e+00> : vector<64x128xf32>
    %2 = tpu.matmul %0, %1, %cst {dimension_numbers = #tpu.dot_dimension_numbers<[1], [1], [0], [0], [0, 0, 1, 0], [], []>} : vector<64x10xf32>, vector<128x10xf32>, vector<64x128xf32> -> vector<64x128xf32>
    %c0_3 = arith.constant 0 : index
    %c0_4 = arith.constant 0 : index
    %3 = vector.load %arg3[%c0_3, %c0_4] : memref<64x1xf32, #tpu.memory_space<vmem>>, vector<64x1xf32>
    %4 = vector.broadcast %3 : vector<64x1xf32> to vector<64x128xf32>
    %5 = arith.addf %2, %4 : vector<64x128xf32>
    %cst_5 = arith.constant 0.000000e+00 : f32
    %6 = vector.broadcast %cst_5 : f32 to vector<64x128xf32>
    %7 = arith.maximumf %5, %6 : vector<64x128xf32>
    %c0_6 = arith.constant 0 : index
    %c0_7 = arith.constant 0 : index
    %8 = vector.load %arg4[%c0_6, %c0_7] : memref<32x64xf32, #tpu.memory_space<vmem>>, vector<32x64xf32>
    %cst_8 = arith.constant dense<0.000000e+00> : vector<32x128xf32>
    %9 = tpu.matmul %8, %7, %cst_8 {dimension_numbers = #tpu.dot_dimension_numbers<[1], [0], [0], [1], [0, 0, 1, 1], [], []>} : vector<32x64xf32>, vector<64x128xf32>, vector<32x128xf32> -> vector<32x128xf32>
    %c0_9 = arith.constant 0 : index
    %c0_10 = arith.constant 0 : index
    %10 = vector.load %arg5[%c0_9, %c0_10] : memref<32x1xf32, #tpu.memory_space<vmem>>, vector<32x1xf32>
    %11 = vector.broadcast %10 : vector<32x1xf32> to vector<32x128xf32>
    %12 = arith.addf %9, %11 : vector<32x128xf32>
    %cst_11 = arith.constant 0.000000e+00 : f32
    %13 = vector.broadcast %cst_11 : f32 to vector<32x128xf32>
    %14 = arith.maximumf %12, %13 : vector<32x128xf32>
    %c0_12 = arith.constant 0 : index
    %c0_13 = arith.constant 0 : index
    %15 = vector.load %arg6[%c0_12, %c0_13] : memref<1x32xf32, #tpu.memory_space<vmem>>, vector<1x32xf32>
    %cst_14 = arith.constant dense<0.000000e+00> : vector<1x128xf32>
    %16 = tpu.matmul %15, %14, %cst_14 {dimension_numbers = #tpu.dot_dimension_numbers<[1], [0], [0], [1], [0, 0, 1, 1], [], []>} : vector<1x32xf32>, vector<32x128xf32>, vector<1x128xf32> -> vector<1x128xf32>
    %c0_15 = arith.constant 0 : index
    %c0_16 = arith.constant 0 : index
    %17 = vector.load %arg7[%c0_15, %c0_16] : memref<1x1xf32, #tpu.memory_space<vmem>>, vector<1x1xf32>
    %18 = vector.broadcast %17 : vector<1x1xf32> to vector<1x128xf32>
    %19 = arith.addf %16, %18 : vector<1x128xf32>
    %20 = arith.negf %19 : vector<1x128xf32>
    %21 = math.exp %20 : vector<1x128xf32>
    %cst_17 = arith.constant 1.000000e+00 : f32
    %22 = vector.broadcast %cst_17 : f32 to vector<1x128xf32>
    %23 = arith.addf %22, %21 : vector<1x128xf32>
    %24 = arith.divf %22, %23 : vector<1x128xf32>
    %c0_18 = arith.constant 0 : index
    %c0_19 = arith.constant 0 : index
    %25 = vector.load %arg8[%c0_18, %c0_19] : memref<1x128xf32, #tpu.memory_space<vmem>>, vector<1x128xf32>
    tpu.vector_store %arg8[%c0_18, %c0_19], %24 {strides = array<i32>} : memref<1x128xf32, #tpu.memory_space<vmem>>, vector<1x128xf32>,
    return
  }
  func.func @transform_0(%arg0: i32) -> (i32, i32) {
    %c0_i32 = arith.constant 0 : i32
    %c0_i32_0 = arith.constant 0 : i32
    return %arg0, %c0_i32 : i32, i32
  }
  func.func @transform_1(%arg0: i32) -> (i32, i32) {
    %c0_i32 = arith.constant 0 : i32
    %c0_i32_0 = arith.constant 0 : i32
    %c0_i32_1 = arith.constant 0 : i32
    return %c0_i32, %c0_i32_0 : i32, i32
  }
  func.func @transform_2(%arg0: i32) -> (i32, i32) {
    %c0_i32 = arith.constant 0 : i32
    %c0_i32_0 = arith.constant 0 : i32
    %c0_i32_1 = arith.constant 0 : i32
    return %c0_i32, %c0_i32_0 : i32, i32
  }
  func.func @transform_3(%arg0: i32) -> (i32, i32) {
    %c0_i32 = arith.constant 0 : i32
    %c0_i32_0 = arith.constant 0 : i32
    %c0_i32_1 = arith.constant 0 : i32
    return %c0_i32, %c0_i32_0 : i32, i32
  }
  func.func @transform_4(%arg0: i32) -> (i32, i32) {
    %c0_i32 = arith.constant 0 : i32
    %c0_i32_0 = arith.constant 0 : i32
    %c0_i32_1 = arith.constant 0 : i32
    return %c0_i32, %c0_i32_0 : i32, i32
  }
  func.func @transform_5(%arg0: i32) -> (i32, i32) {
    %c0_i32 = arith.constant 0 : i32
    %c0_i32_0 = arith.constant 0 : i32
    %c0_i32_1 = arith.constant 0 : i32
    return %c0_i32, %c0_i32_0 : i32, i32
  }
  func.func @transform_6(%arg0: i32) -> (i32, i32) {
    %c0_i32 = arith.constant 0 : i32
    %c0_i32_0 = arith.constant 0 : i32
    %c0_i32_1 = arith.constant 0 : i32
    return %c0_i32, %c0_i32_0 : i32, i32
  }
  func.func @transform_7(%arg0: i32) -> (i32, i32) {
    %c0_i32 = arith.constant 0 : i32
    %c0_i32_0 = arith.constant 0 : i32
    return %c0_i32, %arg0 : i32, i32
  }
}

</mosaic_0001>

<bundles_post_ra>
// kernel: tpu_custom_call.1
= control target key start
LH: loop header
LB: loop body
LE: loop exit
PB: predicated region body
PF: predicated region fallthrough
CT: control target
= control target key end

     0   :  { %s689_s0 = inlined_call_operand.vmem [shape: f32[128,10], index: 0, kind: input, shape index: {}]   ;;  %s690_s1 = inlined_call_operand.vmem [shape: f32[64,10], index: 1, kind: input, shape index: {}]   ;;  %s691_s2 = inlined_call_operand.vmem [shape: f32[64,1], index: 2, kind: input, shape index: {}]   ;;  %s692_s3 = inlined_call_operand.vmem [shape: f32[32,64], index: 3, kind: input, shape index: {}]   ;;  %s693_s4 = inlined_call_operand.vmem [shape: f32[32,1], index: 4, kind: input, shape index: {}]   ;;  %s694_s5 = inlined_call_operand.vmem [shape: f32[1,32], index: 5, kind: input, shape index: {}]   ;;  %s695_s6 = inlined_call_operand.<no memory space> [shape: f32[1,1], index: 6, kind: input, shape index: {}]   ;;  %s696_s7 = inlined_call_operand.hbm [shape: f32[1,128], index: 7, kind: output, shape index: {}]  }
   0x1   :  { %v12_v0 = vstv %s695_s6 }
   0x2   :  { %13 = vst [vmem:[#allocation2] sm:$0x1] %v12_v0 }
   0x3   :  { %v52_v1 = vld [vmem:[%s689_s0 + $0x78] sm:$0xff]  ;;  %vm101_vm0 = vcmask 80896   ;;  %v51_v2 = vld [vmem:[%s689_s0 + $0x70] sm:$0xff] }
   0x4   :  { %395 = vmatpush.xpose.msk.msra.mxu2 %vm101_vm0, %v52_v1  ;;  %396 = vmatpush.xpose.msk.msra.mxu3 %vm101_vm0, %v52_v1 }
   0x5   :  { %365 = vmatpush.xpose.msk.msra.mxu0 %vm101_vm0, %v52_v1 }
   0x6   :  { %14 = vsyncpa [#allocation4], 0  ;;  %v50_v3 = vld [vmem:[%s689_s0 + $0x68] sm:$0xff]  ;;  %v49_v4 = vld [vmem:[%s689_s0 + $0x60] sm:$0xff]  ;;  %v462_v10 = vmov 0   ;;  %vm251_vm1 = vcmask 523264  }
   0x7   :  { %v48_v5 = vld [vmem:[%s689_s0 + $0x58] sm:$0xff]  ;;  %v47_v6 = vld [vmem:[%s689_s0 + $0x50] sm:$0xff]  ;;  %v46_v7 = vld [vmem:[%s689_s0 + $0x48] sm:$0xff]  ;;  %429 = vset.pattern.permute.xlu0 %v462_v10  ;;  %430 = vset.pattern.permute.xlu1 %v462_v10  ;;  %vm305_vm2 = vcmask 261120   ;;  %s356_s9 = sshll.u32 %s696_s7, 4  ;;  %s357_s9 = int_to_ptr.hbm [resolvable:$true] %s356_s9 }
   0x8   :  { %397 = vmatpush.xpose.msk.msra.mxu2 %vm101_vm0, %v51_v2  ;;  %398 = vmatpush.xpose.msk.msra.mxu3 %vm101_vm0, %v51_v2  ;;  %v45_v8 = vld [vmem:[%s689_s0 + $0x40] sm:$0xff]  ;;  %v44_v9 = vld [vmem:[%s689_s0 + $0x38] sm:$0xff]  ;;  %v43_v12 = vld [vmem:[%s689_s0 + $0x30] sm:$0xff] }
   0x9   :  { %366 = vmatpush.xpose.msk.msra.mxu0 %vm101_vm0, %v51_v2  ;;  %431 = vset.pattern.permute.xlu2 %v462_v10  ;;  %v60_v11 = vld [vmem:[%s691_s2 + $0x38] sm:$0xff]  ;;  %v42_v13 = vld [vmem:[%s689_s0 + $0x28] sm:$0xff]  ;;  %v59_v14 = vld [vmem:[%s691_s2 + $0x30] sm:$0xff] }
   0xa   :  { %98 = vperm.xlu0 %429, %v60_v11   ;;  %v41_v15 = vld [vmem:[%s689_s0 + $0x20] sm:$0xff]  ;;  %v40_v16 = vld [vmem:[%s689_s0 + $0x18] sm:$0xff]  ;;  %v54_v17 = vld [vmem:[%s691_s2 + $0x8] sm:$0xff] }
   0xb   :  { %v58_v18 = vld [vmem:[%s691_s2 + $0x28] sm:$0xff]  ;;  %v39_v19 = vld [vmem:[%s689_s0 + $0x10] sm:$0xff]  ;;  %v57_v21 = vld [vmem:[%s691_s2 + $0x20] sm:$0xff] }
   0xc   :  { %399 = vmatpush.xpose.msk.msra.mxu2 %vm101_vm0, %v50_v3  ;;  %400 = vmatpush.xpose.msk.msra.mxu3 %vm101_vm0, %v50_v3  ;;  %v38_v20 = vld [vmem:[%s689_s0 + $0x8] sm:$0xff]  ;;  %v229_v22 = vld [vmem:[%s693_s4 + $0x10] sm:$0xff]  ;;  %v37_v23 = vld [vmem:[%s689_s0] sm:$0xff] }
   0xd   :  { %367 = vmatpush.xpose.msk.msra.mxu0 %vm101_vm0, %v50_v3  ;;  %88 = vperm.xlu1 %430, %v58_v18   ;;  %v30_v24 = vld [vmem:[%s690_s1 + $0x8] sm:$0xff]  ;;  %v35_v25 = vld [vmem:[%s690_s1 + $0x30] sm:$0xff]  ;;  %v29_v26 = vld [vmem:[%s690_s1] sm:$0xff] }
   0xe   :  { %v53_v27 = vld [vmem:[%s691_s2] sm:$0xff]  ;;  %v56_v29 = vld [vmem:[%s691_s2 + $0x18] sm:$0xff]  ;;  %v31_v30 = vld [vmem:[%s690_s1 + $0x10] sm:$0xff] }
   0xf   :  { %v298_v28 = vld [vmem:[#allocation2] sm:$0x1]  ;;  %78 = vperm.xlu2 %431, %v56_v29   ;;  %v36_v31 = vld [vmem:[%s690_s1 + $0x38] sm:$0xff]  ;;  %v55_v32 = vld [vmem:[%s691_s2 + $0x10] sm:$0xff] }
  0x10   :  { %401 = vmatpush.xpose.msk.msra.mxu2 %vm101_vm0, %v49_v4  ;;  %402 = vmatpush.xpose.msk.msra.mxu3 %vm101_vm0, %v49_v4  ;;  %v228_v33 = vld [vmem:[%s693_s4 + $0x8] sm:$0xff]  ;;  %v32_v34 = vld [vmem:[%s690_s1 + $0x18] sm:$0xff]  ;;  %v33_v36 = vld [vmem:[%s690_s1 + $0x20] sm:$0xff] }
  0x11   :  { %368 = vmatpush.xpose.msk.msra.mxu0 %vm101_vm0, %v49_v4  ;;  %v230_v35 = vld [vmem:[%s693_s4 + $0x18] sm:$0xff]  ;;  %v227_v37 = vld [vmem:[%s693_s4] sm:$0xff]  ;;  %v34_v38 = vld [vmem:[%s690_s1 + $0x28] sm:$0xff] }
  0x12   :  { %93 = vperm.xlu0 %429, %v59_v14   ;;  %v226_v10 = vld [vmem:[%s692_s3 + $0x18] sm:$0xff] }
  0x14   :  { %403 = vmatpush.xpose.msk.msra.mxu2 %vm101_vm0, %v48_v5  ;;  %404 = vmatpush.xpose.msk.msra.mxu3 %vm101_vm0, %v48_v5 }
  0x15   :  { %369 = vmatpush.xpose.msk.msra.mxu0 %vm101_vm0, %v48_v5  ;;  %83 = vperm.xlu1 %430, %v57_v21  }
  0x17   :  { %73 = vperm.xlu2 %431, %v55_v32  }
  0x18   :  { %405 = vmatpush.xpose.msk.msra.mxu2 %vm101_vm0, %v47_v6  ;;  %406 = vmatpush.xpose.msk.msra.mxu3 %vm101_vm0, %v47_v6 }
  0x19   :  { %370 = vmatpush.xpose.msk.msra.mxu0 %vm101_vm0, %v47_v6 }
  0x1a   :  { %68 = vperm.xlu0 %429, %v54_v17  }
  0x1c   :  { %407 = vmatpush.xpose.msk.msra.mxu2 %vm101_vm0, %v46_v7  ;;  %408 = vmatpush.xpose.msk.msra.mxu3 %vm101_vm0, %v46_v7 }
  0x1d   :  { %371 = vmatpush.xpose.msk.msra.mxu0 %vm101_vm0, %v46_v7  ;;  %63 = vperm.xlu1 %430, %v53_v27   ;;  %v223_v7 = vld [vmem:[%s692_s3] sm:$0xff] }
  0x1e   :  { %v297_v27 = vld [vmem:[%s694_s5] sm:$0x1]  ;;  %s463_s5 = smov [#allocation3]  }
  0x1f   :  { %248 = vperm.xlu2 %431, %v230_v35   ;;  %s354_s6 = sshll.u32 %s463_s5, 4  ;;  %s355_s6 = int_to_ptr.vmem [resolvable:$true] %s354_s6 }
  0x20   :  { %409 = vmatpush.xpose.msk.msra.mxu2 %vm101_vm0, %v45_v8  ;;  %410 = vmatpush.xpose.msk.msra.mxu3 %vm101_vm0, %v45_v8 }
  0x21   :  { %372 = vmatpush.xpose.msk.msra.mxu0 %vm101_vm0, %v45_v8  ;;  %v224_v8 = vld [vmem:[%s692_s3 + $0x8] sm:$0xff] }
  0x22   :  { %243 = vperm.xlu0 %429, %v229_v22  }
  0x24   :  { %411 = vmatpush.xpose.msk.msra.mxu2 %vm101_vm0, %v44_v9  ;;  %412 = vmatpush.xpose.msk.msra.mxu3 %vm101_vm0, %v44_v9 }
  0x25   :  { %373 = vmatpush.xpose.msk.msra.mxu0 %vm101_vm0, %v44_v9  ;;  %238 = vperm.xlu1 %430, %v228_v33   ;;  %v225_v9 = vld [vmem:[%s692_s3 + $0x10] sm:$0xff] }
  0x27   :  { %233 = vperm.xlu2 %431, %v227_v37  }
  0x28   :  { %413 = vmatpush.xpose.msk.msra.mxu2 %vm101_vm0, %v43_v12  ;;  %414 = vmatpush.xpose.msk.msra.mxu3 %vm101_vm0, %v43_v12 }
  0x29   :  { %374 = vmatpush.xpose.msk.msra.mxu0 %vm101_vm0, %v43_v12 }
  0x2a   :  { %301 = vperm.xlu0 %429, %v298_v28  }
  0x2c   :  { %415 = vmatpush.xpose.msk.msra.mxu2 %vm101_vm0, %v42_v13  ;;  %416 = vmatpush.xpose.msk.msra.mxu3 %vm101_vm0, %v42_v13 }
  0x2d   :  { %375 = vmatpush.xpose.msk.msra.mxu0 %vm101_vm0, %v42_v13 }
  0x30   :  { %417 = vmatpush.xpose.msk.msra.mxu2 %vm101_vm0, %v41_v15  ;;  %418 = vmatpush.xpose.msk.msra.mxu3 %vm101_vm0, %v41_v15 }
  0x31   :  { %376 = vmatpush.xpose.msk.msra.mxu0 %vm101_vm0, %v41_v15 }
  0x34   :  { %419 = vmatpush.xpose.msk.msra.mxu2 %vm101_vm0, %v40_v16  ;;  %420 = vmatpush.xpose.msk.msra.mxu3 %vm101_vm0, %v40_v16 }
  0x35   :  { %377 = vmatpush.xpose.msk.msra.mxu0 %vm101_vm0, %v40_v16 }
  0x38   :  { %421 = vmatpush.xpose.msk.msra.mxu2 %vm101_vm0, %v39_v19  ;;  %422 = vmatpush.xpose.msk.msra.mxu3 %vm101_vm0, %v39_v19 }
  0x39   :  { %378 = vmatpush.xpose.msk.msra.mxu0 %vm101_vm0, %v39_v19 }
  0x3c   :  { %423 = vmatpush.xpose.msk.msra.mxu2 %vm101_vm0, %v38_v20  ;;  %424 = vmatpush.xpose.msk.msra.mxu3 %vm101_vm0, %v38_v20 }
  0x3d   :  { %379 = vmatpush.xpose.msk.msra.mxu0 %vm101_vm0, %v38_v20 }
  0x40   :  { %425 = vmatpush.xpose.msk.msra.mxu2 %vm101_vm0, %v37_v23  ;;  %426 = vmatpush.xpose.msk.msra.mxu3 %vm101_vm0, %v37_v23 }
  0x41   :  { %380 = vmatpush.xpose.msk.msra.mxu0 %vm101_vm0, %v37_v23 }
  0x43   :  { %382 = vmatmul.msk.f32.vlgmr.msra.gmra.mxu2 %vm101_vm0, %v30_v24  ;;  %387 = vmatmul.msk.f32.vlgmr.msra.gmra.mxu3 %vm101_vm0, %v35_v25 }
  0x44   :  { %381 = vmatmul.msk.f32.vlgmr.msra.gmra.mxu0 %vm101_vm0, %v29_v26 }
  0x4b   :  { %383 = vmatmul.msk.f32.gmra.mxu2 %vm101_vm0, %v31_v30  ;;  %388 = vmatmul.msk.f32.gmra.mxu3 %vm101_vm0, %v36_v31 }
  0x53   :  { %384 = vmatmul.msk.f32.gmra.mxu2 %vm101_vm0, %v32_v34 }
  0x5b   :  { %385 = vmatmul.msk.f32.gmra.mxu2 %vm101_vm0, %v33_v36 }
  0x63   :  { %386 = vmatmul.msk.f32.gmra.mxu2 %vm101_vm0, %v34_v38 }
  0x69   :  { %v79_v51 = vpop.permute.xlu2 %78 }
  0x71   :  { %v74_v57 = vpop.permute.xlu2 %73 }
  0x79   :  { %v249_v14 = vpop.permute.xlu2 %248 }
  0x7c   :  { %v99_v39 = vpop.permute.xlu0 %98 }
  0x7f   :  { %v89_v50 = vpop.permute.xlu1 %88 }
  0x81   :  { %v234_v22 = vpop.permute.xlu2 %233 }
  0x84   :  { %v94_v42 = vpop.permute.xlu0 %93 }
  0x87   :  { %v84_v53 = vpop.permute.xlu1 %83 }
  0x8c   :  { %v69_v60 = vpop.permute.xlu0 %68 }
  0x8f   :  { %v64_v2 = vpop.permute.xlu1 %63 }
  0x94   :  { %v244_v15 = vpop.permute.xlu0 %243 }
  0x97   :  { %v239_v19 = vpop.permute.xlu1 %238 }
  0x9c   :  { %v302_v28 = vpop.permute.xlu0 %301 }
  0x9d   :  { %v304_v29 = vperm.slane %v302_v28, 0 }
  0xc1   :  { %v191_v63 = vpop.f32.mrf.mxu0 }
  0xc2   :  { %v192_v4 = vadd.f32 %v191_v63, %v64_v2 }
  0xc4   :  { %v215_v6 = vmax.f32 %v192_v4, 0.0 }
  0xc6   :  { %v194_v40 = vpop.f32.mrf.mxu2  ;;  %v209_v41 = vpop.f32.mrf.mxu3 }
  0xc7   :  { %v210_v43 = vadd.f32 %v209_v41, %v94_v42  ;;  %v195_v0 = vadd.f32 %v194_v40, %v69_v60 }
  0xc9   :  { %v221_v47 = vmax.f32 %v210_v43, 0.0  ;;  %v216_v5 = vmax.f32 %v195_v0, 0.0 }
  0xce   :  { %v197_v44 = vpop.f32.mrf.mxu2  ;;  %v212_v45 = vpop.f32.mrf.mxu3 }
  0xcf   :  { %v213_v46 = vadd.f32 %v212_v45, %v99_v39  ;;  %v198_v61 = vadd.f32 %v197_v44, %v74_v57 }
  0xd1   :  { %v222_v48 = vmax.f32 %v213_v46, 0.0  ;;  %v217_v3 = vmax.f32 %v198_v61, 0.0 }
  0xd3   :  { %272 = vmatpush.msra.mxu1 %v222_v48 }
  0xd5   :  { %273 = vmatpush.msra.mxu1 %v221_v47 }
  0xd6   :  { %v200_v49 = vpop.f32.mrf.mxu2 }
  0xd7   :  { %v201_v58 = vadd.f32 %v200_v49, %v79_v51 }
  0xd9   :  { %v218_v1 = vmax.f32 %v201_v58, 0.0 }
  0xde   :  { %v203_v52 = vpop.f32.mrf.mxu2 }
  0xdf   :  { %v204_v55 = vadd.f32 %v203_v52, %v84_v53 }
  0xe1   :  { %v219_v62 = vmax.f32 %v204_v55, 0.0 }
  0xe6   :  { %v206_v54 = vpop.f32.mrf.mxu2 }
  0xe7   :  { %v207_v56 = vadd.f32 %v206_v54, %v89_v50 }
  0xe9   :  { %v220_v59 = vmax.f32 %v207_v56, 0.0 }
  0xeb   :  { %274 = vmatpush.msra.mxu1 %v220_v59 }
  0xed   :  { %275 = vmatpush.msra.mxu1 %v219_v62 }
  0xef   :  { %276 = vmatpush.msra.mxu1 %v218_v1 }
  0xf1   :  { %277 = vmatpush.msra.mxu1 %v217_v3 }
  0xf3   :  { %278 = vmatpush.msra.mxu1 %v216_v5 }
  0xf5   :  { %279 = vmatpush.msra.mxu1 %v215_v6 }
  0xf6   :  { %389 = vmatmul.msk.f32.vlgmr.msra.gmra.mxu1 %vm251_vm1, %v223_v7 }
  0xfe   :  { %390 = vmatmul.msk.f32.gmra.mxu1 %vm251_vm1, %v224_v8 }
 0x106   :  { %391 = vmatmul.msk.f32.gmra.mxu1 %vm251_vm1, %v225_v9 }
 0x10e   :  { %392 = vmatmul.msk.f32.gmra.mxu1 %vm251_vm1, %v226_v10 }
 0x173   :  { %v281_v11 = vpop.f32.mrf.mxu1 }
 0x174   :  { %v282_v23 = vadd.f32 %v281_v11, %v234_v22 }
 0x176   :  { %v293_v26 = vmax.f32 %v282_v23, 0.0 }
 0x17b   :  { %v284_v12 = vpop.f32.mrf.mxu1 }
 0x17c   :  { %v285_v20 = vadd.f32 %v284_v12, %v239_v19 }
 0x17e   :  { %v294_v25 = vmax.f32 %v285_v20, 0.0 }
 0x183   :  { %v287_v13 = vpop.f32.mrf.mxu1 }
 0x184   :  { %v288_v17 = vadd.f32 %v287_v13, %v244_v15 }
 0x186   :  { %v295_v24 = vmax.f32 %v288_v17, 0.0 }
 0x18b   :  { %v290_v16 = vpop.f32.mrf.mxu1 }
 0x18c   :  { %v291_v18 = vadd.f32 %v290_v16, %v249_v14 }
 0x18e   :  { %v296_v21 = vmax.f32 %v291_v18, 0.0 }
 0x190   :  { %321 = vmatpush.msrb.mxu1 %v296_v21 }
 0x192   :  { %322 = vmatpush.msrb.mxu1 %v295_v24 }
 0x194   :  { %323 = vmatpush.msrb.mxu1 %v294_v25 }
 0x196   :  { %324 = vmatpush.msrb.mxu1 %v293_v26 }
 0x197   :  { %393 = vmatmul.msk.f32.vlgmr.msrb.gmra.mxu1 %vm305_vm2, %v297_v27 }
 0x214   :  { %v326_v30 = vpop.f32.mrf.mxu1 }
 0x215   :  { %v327_v31 = vadd.f32 %v326_v30, %v304_v29 }
 0x217   :  { %v394_v32 = vmul.f32 -1.442695, %v327_v31 }
 0x219   :  { %432 = vpow2.f32 %v394_v32 }
 0x21f   :  { %v433_v33 = vpop.eup %432 }
 0x220   :  { %v332_v34 = vadd.f32 1.0, %v433_v33 }
 0x222   :  { %434 = vrcp.f32 %v332_v34  ;;  %v344_v38 = vand.u32 2147483648, %v332_v34  ;;  %v342_v40 = vand.u32 2147483647, %v332_v34  ;;  %vm338_vm4 = vweird.f32 %v332_v34 }
 0x224   :  { %v345_v42 = vor.u32 1.1754944e-38, %v344_v38  ;;  %vm343_vm6 = vcmp.eq.f32.partialorder %v342_v40, 8.507059e+37 }
 0x228   :  { %v435_v35 = vpop.eup %434 }
 0x229   :  { %v334_v36 = vmul.f32 %v435_v35, %v332_v34  ;;  %vm339_vm3 = vweird.f32 %v435_v35 }
 0x22a   :  { %vm340_vm5 = vmor %vm338_vm4, %vm339_vm3 }
 0x22b   :  { %v335_v37 = vsub.f32 1.0, %v334_v36 }
 0x22d   :  { %v336_v39 = vmul.f32 %v435_v35, %v335_v37 }
 0x22f   :  { %v337_v41 = vadd.f32 %v435_v35, %v336_v39 }
 0x231   :  { %v341_v43 = vsel %vm340_vm5, %v435_v35, %v337_v41 }
 0x232   :  { %v346_v44 = vsel %vm343_vm6, %v345_v42, %v341_v43 }
 0x233   :  { %348 = vst [vmem:[#allocation3] sm:$0x1] %v346_v44 }
 0x234   :  { %359 = dma.vmem_to_hbm [thread:$0]  %s355_s6, 16, %s357_s9, [#allocation4]  }
 0x235   :  { %460 = dma.done.wait [#allocation4], 16  }
 0x236   :  { %461 = vsyncadd [#allocation4], 4294967280 }
 0x237   :  { %364 = vsyncpa [#allocation4], 1 }

</bundles_post_ra>
